<compile_context>
chip_gen: v5e
topology: v5e:2x2
jax: 0.10.0
libtpu: 0.0.40
codegen_flags: <defaults>
</compile_context>

<pallas_src>
import functools

import jax
import jax.numpy as jnp
from jax import lax
from jax.experimental import pallas as pl
from jax.experimental.pallas import tpu as pltpu

LANE = 128
_VMEM_LIMIT_BYTES = 32 * 1024 * 1024    # scoped-VMEM limit (safe on v5e/v6e/v7x)
_H_RESIDENT_BUDGET = 16 * 1024 * 1024   # budget gate for the resident-H plan


def _round_up(v, m):
    return ((v + m - 1) // m) * m


def _pick_tile(n_pad, max_tile):
    """Largest power-of-two tile <= max_tile dividing n_pad (n_pad % 128 == 0)."""
    t = max_tile
    while n_pad % t != 0:
        t //= 2
    return max(t, LANE)


# --------------------------------------------------------------------------
# Kernels
# --------------------------------------------------------------------------
def transform_kernel(x_ref, wt_ref, s_ref, b_ref, o_ref, acc_ref):
    """o = (x @ wt) * s + b, K-tiled with an f32 VMEM accumulator."""
    k = pl.program_id(1)

    @pl.when(k == 0)
    def _():
        acc_ref[...] = jnp.zeros_like(acc_ref)

    acc_ref[...] += jnp.dot(x_ref[...], wt_ref[...],
                            preferred_element_type=jnp.float32)

    @pl.when(k == pl.num_programs(1) - 1)
    def _():
        o_ref[...] = (acc_ref[...] * s_ref[...] + b_ref[...]).astype(o_ref.dtype)


def agg_stream_kernel(a_ref, h_ref, s_ref, b_ref, o_ref, acc_ref):
    """o = (A_hat @ H) * s + b, H k-slabs streamed from HBM."""
    k = pl.program_id(1)

    @pl.when(k == 0)
    def _():
        acc_ref[...] = jnp.zeros_like(acc_ref)

    h = h_ref[...]
    # int8 -> bf16 cast happens in VMEM (VPU); HBM only ever sees 1 B/elem of A.
    acc_ref[...] += jnp.dot(a_ref[...].astype(h.dtype), h,
                            preferred_element_type=jnp.float32)

    @pl.when(k == pl.num_programs(1) - 1)
    def _():
        o_ref[...] = (acc_ref[...] * s_ref[...] + b_ref[...]).astype(o_ref.dtype)


def agg_resident_kernel(a_ref, h_ref, s_ref, b_ref, o_ref, acc_ref, *, tk):
    """Same as agg_stream_kernel but H is fully resident in VMEM (DMA'd once)."""
    k = pl.program_id(1)

    @pl.when(k == 0)
    def _():
        acc_ref[...] = jnp.zeros_like(acc_ref)

    start = pl.multiple_of(k * tk, tk)
    h = h_ref[pl.ds(start, tk), :]
    acc_ref[...] += jnp.dot(a_ref[...].astype(h.dtype), h,
                            preferred_element_type=jnp.float32)

    @pl.when(k == pl.num_programs(1) - 1)
    def _():
        o_ref[...] = (acc_ref[...] * s_ref[...] + b_ref[...]).astype(o_ref.dtype)


# --------------------------------------------------------------------------
# pallas_call wrappers
# --------------------------------------------------------------------------
def _transform(x_p, wt_p, scale, bias, out_dtype, *, max_tm=512):
    """(n_pad, K) @ (K, C) with K tiling; epilogue o = acc * scale + bias."""
    n_pad, kdim = x_p.shape
    c = wt_p.shape[1]
    tm = _pick_tile(n_pad, max_tm)
    if kdim <= 512:
        tk = kdim                 # block == full dim is always legal
    elif kdim % 512 == 0:
        tk = 512
    elif kdim % 256 == 0:
        tk = 256
    else:
        tk = 128                  # callers pad kdim to a multiple of 128 when > 512

    return pl.pallas_call(
        transform_kernel,
        out_shape=jax.ShapeDtypeStruct((n_pad, c), out_dtype),
        grid=(n_pad // tm, kdim // tk),
        in_specs=[
            pl.BlockSpec((tm, tk), lambda i, k: (i, k)),
            pl.BlockSpec((tk, c), lambda i, k: (k, 0)),
            pl.BlockSpec((tm, 1), lambda i, k: (i, 0)),
            pl.BlockSpec((1, c), lambda i, k: (0, 0)),
        ],
        out_specs=pl.BlockSpec((tm, c), lambda i, k: (i, 0)),
        scratch_shapes=[pltpu.VMEM((tm, c), jnp.float32)],
        compiler_params=pltpu.CompilerParams(
            dimension_semantics=("parallel", "arbitrary"),
            vmem_limit_bytes=_VMEM_LIMIT_BYTES),
    )(x_p, wt_p, scale, bias)


def _aggregate(a_hat, h, dinv, bias, out_dtype, *, max_tm=512, max_tk=1024,
               h_resident=None):
    """(n_pad, n_pad) int8 A_hat @ (n_pad, C) H; epilogue o = acc*dinv_i + b."""
    n_pad = a_hat.shape[0]
    c = h.shape[1]
    tm = _pick_tile(n_pad, max_tm)
    tk = _pick_tile(n_pad, max_tk)    # decoupled, larger reduction tile

    if h_resident is None:
        h_bytes = n_pad * c * h.dtype.itemsize
        fixed = (2 * tm * tk * a_hat.dtype.itemsize          # A double buffers
                 + tm * c * 4                                 # f32 accumulator
                 + 2 * tm * c * jnp.dtype(out_dtype).itemsize # output buffers
                 + 2 * (tm + c) * 4)                          # dinv + bias
        h_resident = fixed + 2 * h_bytes <= _H_RESIDENT_BUDGET

    if h_resident:
        kernel = functools.partial(agg_resident_kernel, tk=tk)
        h_spec = pl.BlockSpec((n_pad, c), lambda i, k: (0, 0))   # DMA'd once
    else:
        kernel = agg_stream_kernel
        h_spec = pl.BlockSpec((tk, c), lambda i, k: (k, 0))

    return pl.pallas_call(
        kernel,
        out_shape=jax.ShapeDtypeStruct((n_pad, c), out_dtype),
        grid=(n_pad // tm, n_pad // tk),
        in_specs=[
            pl.BlockSpec((tm, tk), lambda i, k: (i, k)),   # int8 A_hat tile
            h_spec,
            pl.BlockSpec((tm, 1), lambda i, k: (i, 0)),    # D^{-1/2} rows (f32)
            pl.BlockSpec((1, c), lambda i, k: (0, 0)),     # bias (f32)
        ],
        out_specs=pl.BlockSpec((tm, c), lambda i, k: (i, 0)),
        scratch_shapes=[pltpu.VMEM((tm, c), jnp.float32)],
        compiler_params=pltpu.CompilerParams(
            dimension_semantics=("parallel", "arbitrary"),
            vmem_limit_bytes=_VMEM_LIMIT_BYTES),
    )(a_hat, h, dinv, bias)


# --------------------------------------------------------------------------
# Graph glue + layer wrapper
# --------------------------------------------------------------------------
def build_gcn_graph(edge_index, num_nodes, n_pad):
    """Glue (plain JAX): padded int8 A_hat and f32 D^{-1/2}.

    Built directly at the padded shape / 1-byte dtype so the aggregation kernel
    streams 1 B/elem and no extra dense pad+cast pass is needed.  Degrees come
    from the edge list (O(E)).  int8 caps edge multiplicity at 127.
    """
    src = edge_index[0].astype(jnp.int32)
    dst = edge_index[1].astype(jnp.int32)

    a_hat = jnp.zeros((n_pad, n_pad), jnp.int8).at[dst, src].add(jnp.int8(1))
    idx = jnp.arange(num_nodes)
    diag = a_hat[idx, idx]
    # add_remaining_self_loops: only add a self loop where none exists (PyG).
    a_hat = a_hat.at[idx, idx].set(jnp.where(diag > 0, diag, jnp.int8(1)))

    ones_e = jnp.ones(src.shape, jnp.float32)
    deg = jnp.zeros((n_pad,), jnp.float32).at[dst].add(ones_e)
    self_cnt = jnp.zeros((n_pad,), jnp.float32).at[dst].add(
        jnp.where(src == dst, 1.0, 0.0))
    node_mask = jnp.arange(n_pad) < num_nodes
    deg = jnp.where(node_mask, deg + jnp.where(self_cnt == 0.0, 1.0, 0.0), 0.0)
    dinv_sqrt = jnp.where(deg > 0.0, lax.rsqrt(deg), 0.0).reshape(n_pad, 1)
    return a_hat, dinv_sqrt


def gcn_layer_pallas(x, edge_index, w, b, *, max_tm=512, max_tk=1024,
                     compute_dtype=jnp.bfloat16, h_resident=None):
    """GCNConv forward: D^{-1/2} A_hat D^{-1/2} @ (X @ W^T) + b."""
    n, c_in = x.shape
    c_out = w.shape[0]
    out_dtype = x.dtype
    n_pad = _round_up(max(n, 1), LANE)
    c_out_pad = _round_up(c_out, LANE)

    a_hat, dinv = build_gcn_graph(edge_index, n, n_pad)
    b_pad = jnp.pad(b.reshape(1, -1).astype(jnp.float32),
                    ((0, 0), (0, c_out_pad - c_out)))

    aggregate_first = c_in < c_out
    if aggregate_first:
        # out = ((A_hat @ (D^{-1/2} X)) * D^{-1/2}) @ W^T + b
        c_mid = _round_up(c_in, LANE)
        xs = jnp.pad((x.astype(jnp.float32) * dinv[:n]).astype(compute_dtype),
                     ((0, n_pad - n), (0, c_mid - c_in)))
        zeros_mid = jnp.zeros((1, c_mid), jnp.float32)
        m = _aggregate(a_hat, xs, dinv, zeros_mid, compute_dtype,
                       max_tm=max_tm, max_tk=max_tk, h_resident=h_resident)
        wt = jnp.pad(jnp.transpose(w).astype(compute_dtype),
                     ((0, c_mid - c_in), (0, c_out_pad - c_out)))
        ones = jnp.ones((n_pad, 1), jnp.float32)
        out = _transform(m, wt, ones, b_pad, out_dtype, max_tm=max_tm)
    else:
        # out = (A_hat @ ((X @ W^T) * D^{-1/2})) * D^{-1/2} + b
        k_pad = _round_up(c_in, 512) if c_in > 512 else c_in
        xp = jnp.pad(x.astype(compute_dtype),
                     ((0, n_pad - n), (0, k_pad - c_in)))
        wt = jnp.pad(jnp.transpose(w).astype(compute_dtype),
                     ((0, k_pad - c_in), (0, c_out_pad - c_out)))
        zeros_out = jnp.zeros((1, c_out_pad), jnp.float32)
        h = _transform(xp, wt, dinv, zeros_out, compute_dtype, max_tm=max_tm)
        out = _aggregate(a_hat, h, dinv, b_pad, out_dtype,
                         max_tm=max_tm, max_tk=max_tk, h_resident=h_resident)

    return out[:n, :c_out]


def init_gcn_params(key, in_channels, out_channels):
    """Glorot weight, zero bias (matches GCNConv reset_parameters)."""
    limit = jnp.sqrt(6.0 / (in_channels + out_channels))
    w = jax.random.uniform(key, (out_channels, in_channels),
                           minval=-limit, maxval=limit, dtype=jnp.float32)
    b = jnp.zeros((1, out_channels), dtype=jnp.float32)
    return w, b


def _mirror(x, a_hat, dinv, w, b, aggregate_first, compute_dtype=jnp.bfloat16):
    """Plain-JAX mirror of the kernel math (bf16 intermediates, f32 acc)."""
    n = x.shape[0]
    f32 = jnp.float32
    a = a_hat[:n, :n].astype(f32)
    d = dinv[:n].astype(f32)
    wt = jnp.transpose(w).astype(compute_dtype).astype(f32)
    if aggregate_first:
        xs = (x.astype(f32) * d).astype(compute_dtype).astype(f32)
        m = ((a @ xs) * d).astype(compute_dtype).astype(f32)
        return m @ wt + b
    h = ((x.astype(compute_dtype).astype(f32) @ wt) * d
         ).astype(compute_dtype).astype(f32)
    return (a @ h) * d + b


if __name__ == "__main__":
    key = jax.random.PRNGKey(0)

    def run_case(case_key, num_nodes, c_in, c_out, num_edges, h_resident):
        k_feat, k_src, k_dst, k_w = jax.random.split(case_key, 4)
        x = jax.random.normal(k_feat, (num_nodes, c_in), dtype=jnp.float32)
        src = jax.random.randint(k_src, (num_edges,), 0, num_nodes)
        dst = jax.random.randint(k_dst, (num_edges,), 0, num_nodes)
        edge_index = jnp.stack([src, dst]).astype(jnp.int32)
        w, b = init_gcn_params(k_w, c_in, c_out)

        out = gcn_layer_pallas(x, edge_index, w, b, h_resident=h_resident)
        out = jax.block_until_ready(out)
        assert out.shape == (num_nodes, c_out)

        n_pad = _round_up(num_nodes, LANE)
        a_hat, dinv = build_gcn_graph(edge_index, num_nodes, n_pad)
        aggregate_first = c_in < c_out

        # Reference 1: mirror of the exact kernel math (bf16 in, f32 acc).
        ref_mirror = _mirror(x, a_hat, dinv, w, b, aggregate_first)
        assert jnp.allclose(out, ref_mirror, atol=1e-2, rtol=1e-2)

        # Reference 2: loose check against full-f32 GCN math.
        a = a_hat[:num_nodes, :num_nodes].astype(jnp.float32)
        d = dinv[:num_nodes]
        a_norm = d * a * d.T
        ref_f32 = a_norm @ (x @ w.T) + b
        assert jnp.allclose(out, ref_f32, atol=5e-2, rtol=5e-2)

    k1, k2 = jax.random.split(key)
    # Case 1: c_in < c_out -> aggregate-first order, resident-H aggregation.
    run_case(k1, num_nodes=16, c_in=8, c_out=32, num_edges=40, h_resident=None)
    # Case 2: c_in > c_out -> transform-first order, streamed-H aggregation,
    # multi-tile (row, k) accumulation grid.
    run_case(k2, num_nodes=300, c_in=48, c_out=16, num_edges=900,
             h_resident=False)

    print("KERNEL_OK")
</pallas_src>

<mosaic_0001>
module attributes {stable_mosaic.version = 11 : i64} {
  func.func @agg_resident_kernel(%arg0: i32, %arg1: i32, %arg2: memref<128x128xi8, #tpu.memory_space<vmem>>, %arg3: memref<128x128xbf16, #tpu.memory_space<vmem>>, %arg4: memref<128x1xf32, #tpu.memory_space<vmem>>, %arg5: memref<1x128xf32, #tpu.memory_space<vmem>>, %arg6: memref<128x128xbf16, #tpu.memory_space<vmem>>, %arg7: memref<128x128xf32, #tpu.memory_space<vmem>>) attributes {dimension_semantics = [#tpu.dimension_semantics<parallel>, #tpu.dimension_semantics<arbitrary>], iteration_bounds = array<i64: 1, 1>, scalar_prefetch = 0 : i64, scratch_operands = 1 : i64, tpu.core_type = #tpu.core_type<tc>, window_params = [{transform_indices = @transform_0, window_bounds = array<i64: 128, 128>}, {pipeline_mode = #tpu.pipeline_mode<synchronous>, transform_indices = @transform_1, window_bounds = array<i64: 128, 128>}, {transform_indices = @transform_2, window_bounds = array<i64: 128, 1>}, {pipeline_mode = #tpu.pipeline_mode<synchronous>, transform_indices = @transform_3, window_bounds = array<i64: 1, 128>}, {transform_indices = @transform_4, window_bounds = array<i64: 128, 128>}]} {
    %c0_i32 = arith.constant 0 : i32
    %0 = arith.cmpi eq, %arg1, %c0_i32 : i32
    %1 = arith.extui %0 : i1 to i32
    %c0_i32_0 = arith.constant 0 : i32
    %2 = arith.cmpi ne, %1, %c0_i32_0 : i32
    scf.if %2 {
      %cst_9 = arith.constant 0.000000e+00 : f32
      %16 = vector.broadcast %cst_9 : f32 to vector<128x128xf32>
      %c0_10 = arith.constant 0 : index
      %c0_11 = arith.constant 0 : index
      %17 = vector.load %arg7[%c0_10, %c0_11] : memref<128x128xf32, #tpu.memory_space<vmem>>, vector<128x128xf32>
      tpu.vector_store %arg7[%c0_10, %c0_11], %16 {strides = array<i32>} : memref<128x128xf32, #tpu.memory_space<vmem>>, vector<128x128xf32>,
    } else {
    }
    %c128_i32 = arith.constant 128 : i32
    %3 = arith.muli %arg1, %c128_i32 : i32
    %4 = tpu.assume_multiple %3, 128 : i32
    %5 = arith.index_cast %4 : i32 to index
    %c0 = arith.constant 0 : index
    %6 = vector.load %arg3[%5, %c0] : memref<128x128xbf16, #tpu.memory_space<vmem>>, vector<128x128xbf16>
    %c0_1 = arith.constant 0 : index
    %c0_2 = arith.constant 0 : index
    %7 = vector.load %arg7[%c0_1, %c0_2] : memref<128x128xf32, #tpu.memory_space<vmem>>, vector<128x128xf32>
    %c0_3 = arith.constant 0 : index
    %c0_4 = arith.constant 0 : index
    %8 = vector.load %arg2[%c0_3, %c0_4] : memref<128x128xi8, #tpu.memory_space<vmem>>, vector<128x128xi8>
    %9 = arith.sitofp %8 : vector<128x128xi8> to vector<128x128xbf16>
    %cst = arith.constant dense<0.000000e+00> : vector<128x128xf32>
    %10 = tpu.matmul %9, %6, %cst {dimension_numbers = #tpu.dot_dimension_numbers<[1], [0], [0], [1], [0, 0, 1, 1], [], []>} : vector<128x128xbf16>, vector<128x128xbf16>, vector<128x128xf32> -> vector<128x128xf32>
    %11 = arith.addf %7, %10 : vector<128x128xf32>
    %c0_5 = arith.constant 0 : index
    %c0_6 = arith.constant 0 : index
    %12 = vector.load %arg7[%c0_5, %c0_6] : memref<128x128xf32, #tpu.memory_space<vmem>>, vector<128x128xf32>
    tpu.vector_store %arg7[%c0_5, %c0_6], %11 {strides = array<i32>} : memref<128x128xf32, #tpu.memory_space<vmem>>, vector<128x128xf32>,
    %c0_i32_7 = arith.constant 0 : i32
    %13 = arith.cmpi eq, %arg1, %c0_i32_7 : i32
    %14 = arith.extui %13 : i1 to i32
    %c0_i32_8 = arith.constant 0 : i32
    %15 = arith.cmpi ne, %14, %c0_i32_8 : i32
    scf.if %15 {
      %c0_9 = arith.constant 0 : index
      %c0_10 = arith.constant 0 : index
      %16 = vector.load %arg7[%c0_9, %c0_10] : memref<128x128xf32, #tpu.memory_space<vmem>>, vector<128x128xf32>
      %c0_11 = arith.constant 0 : index
      %c0_12 = arith.constant 0 : index
      %17 = vector.load %arg4[%c0_11, %c0_12] : memref<128x1xf32, #tpu.memory_space<vmem>>, vector<128x1xf32>
      %18 = vector.broadcast %17 : vector<128x1xf32> to vector<128x128xf32>
      %19 = arith.mulf %16, %18 : vector<128x128xf32>
      %c0_13 = arith.constant 0 : index
      %c0_14 = arith.constant 0 : index
      %20 = vector.load %arg5[%c0_13, %c0_14] : memref<1x128xf32, #tpu.memory_space<vmem>>, vector<1x128xf32>
      %21 = vector.broadcast %20 : vector<1x128xf32> to vector<128x128xf32>
      %22 = arith.addf %19, %21 : vector<128x128xf32>
      %23 = arith.truncf %22 : vector<128x128xf32> to vector<128x128xbf16>
      %c0_15 = arith.constant 0 : index
      %c0_16 = arith.constant 0 : index
      %24 = vector.load %arg6[%c0_15, %c0_16] : memref<128x128xbf16, #tpu.memory_space<vmem>>, vector<128x128xbf16>
      tpu.vector_store %arg6[%c0_15, %c0_16], %23 {strides = array<i32>} : memref<128x128xbf16, #tpu.memory_space<vmem>>, vector<128x128xbf16>,
    } else {
    }
    return
  }
  func.func @transform_0(%arg0: i32, %arg1: i32) -> (i32, i32) {
    %c0_i32 = arith.constant 0 : i32
    return %arg0, %arg1 : i32, i32
  }
  func.func @transform_1(%arg0: i32, %arg1: i32) -> (i32, i32) {
    %c0_i32 = arith.constant 0 : i32
    %c0_i32_0 = arith.constant 0 : i32
    %c0_i32_1 = arith.constant 0 : i32
    return %c0_i32, %c0_i32_0 : i32, i32
  }
  func.func @transform_2(%arg0: i32, %arg1: i32) -> (i32, i32) {
    %c0_i32 = arith.constant 0 : i32
    %c0_i32_0 = arith.constant 0 : i32
    return %arg0, %c0_i32 : i32, i32
  }
  func.func @transform_3(%arg0: i32, %arg1: i32) -> (i32, i32) {
    %c0_i32 = arith.constant 0 : i32
    %c0_i32_0 = arith.constant 0 : i32
    %c0_i32_1 = arith.constant 0 : i32
    return %c0_i32, %c0_i32_0 : i32, i32
  }
  func.func @transform_4(%arg0: i32, %arg1: i32) -> (i32, i32) {
    %c0_i32 = arith.constant 0 : i32
    %c0_i32_0 = arith.constant 0 : i32
    return %arg0, %c0_i32 : i32, i32
  }
}

</mosaic_0001>

<bundles_post_ra>
// kernel: tpu_custom_call.1
= control target key start
LH: loop header
LB: loop body
LE: loop exit
PB: predicated region body
PF: predicated region fallthrough
CT: control target
= control target key end

     0   :  { %v596_v2 = vmov 0   ;;  %s757_s0 = inlined_call_operand.vmem [shape: s8[128,128], index: 0, kind: input, shape index: {}]   ;;  %s758_s1 = inlined_call_operand.vmem [shape: bf16[128,128], index: 1, kind: input, shape index: {}]   ;;  %s759_s2 = inlined_call_operand.vmem [shape: f32[128,1], index: 2, kind: input, shape index: {}]   ;;  %s760_s3 = inlined_call_operand.vmem [shape: f32[1,128], index: 3, kind: input, shape index: {}]   ;;  %s761_s4 = inlined_call_operand.hbm [shape: bf16[128,128], index: 4, kind: output, shape index: {}]  }
   0x1   :  { %v267_v0 = vld [vmem:[%s759_s2] sm:$0xff]  ;;  %v490_v1 = vld [vmem:[%s758_s1 + $0x38] sm:$0xff]  ;;  %566 = vset.pattern.permute.xlu0 %v596_v2  ;;  %567 = vset.pattern.permute.xlu1 %v596_v2  ;;  %v269_v3 = vld [vmem:[%s759_s2 + $0x10] sm:$0xff] }
   0x2   :  { %285 = vperm.xlu0 %566, %v267_v0   ;;  %167 = vmatpush.bf16.msra.mxu0 %v490_v1  ;;  %v489_v4 = vld [vmem:[%s758_s1 + $0x30] sm:$0xff]  ;;  %v488_v5 = vld [vmem:[%s758_s1 + $0x28] sm:$0xff]  ;;  %v271_v6 = vld [vmem:[%s759_s2 + $0x20] sm:$0xff] }
   0x3   :  { %538 = vmatpush.bf16.msra.mxu1 %v490_v1  ;;  %539 = vmatpush.bf16.msra.mxu2 %v490_v1  ;;  %v268_v7 = vld [vmem:[%s759_s2 + $0x8] sm:$0xff] }
   0x4   :  { %540 = vmatpush.bf16.msra.mxu3 %v490_v1  ;;  %295 = vperm.xlu1 %567, %v269_v3  }
   0x5   :  { %568 = vset.pattern.permute.xlu2 %v596_v2 }
   0x6   :  { %168 = vmatpush.bf16.msra.mxu0 %v489_v4  ;;  %305 = vperm.xlu2 %568, %v271_v6  }
   0x7   :  { %541 = vmatpush.bf16.msra.mxu1 %v489_v4  ;;  %542 = vmatpush.bf16.msra.mxu2 %v489_v4 }
   0x8   :  { %543 = vmatpush.bf16.msra.mxu3 %v489_v4 }
   0x9   :  { %9 = vsyncpa [#allocation4], 0  ;;  %v270_v8 = vld [vmem:[%s759_s2 + $0x18] sm:$0xff]  ;;  %v487_v9 = vld [vmem:[%s758_s1 + $0x20] sm:$0xff]  ;;  %s437_s21 = sshll.u32 %s761_s4, 4  ;;  %s598_s22 = smov 64   ;;  %s438_s21 = int_to_ptr.hbm [resolvable:$true] %s437_s21 }
   0xa   :  { %290 = vperm.xlu0 %566, %v268_v7   ;;  %169 = vmatpush.bf16.msra.mxu0 %v488_v5  ;;  %v272_v10 = vld [vmem:[%s759_s2 + $0x28] sm:$0xff]  ;;  %v486_v11 = vld [vmem:[%s758_s1 + $0x18] sm:$0xff]  ;;  %v273_v12 = vld [vmem:[%s759_s2 + $0x30] sm:$0xff]  ;;  %s599_s23 = smov 4  }
   0xb   :  { %544 = vmatpush.bf16.msra.mxu1 %v488_v5  ;;  %545 = vmatpush.bf16.msra.mxu2 %v488_v5  ;;  %v274_v13 = vld [vmem:[%s759_s2 + $0x38] sm:$0xff]  ;;  %v485_v14 = vld [vmem:[%s758_s1 + $0x10] sm:$0xff]  ;;  %v670_v15 = vld [vmem:[%s757_s0] sm:$0xff] }
   0xc   :  { %546 = vmatpush.bf16.msra.mxu3 %v488_v5  ;;  %300 = vperm.xlu1 %567, %v270_v8   ;;  %v675_v16 = vld [vmem:[%s757_s0 + $0x8] sm:$0xff]  ;;  %v680_v17 = vld [vmem:[%s757_s0 + $0x10] sm:$0xff]  ;;  %v685_v18 = vld [vmem:[%s757_s0 + $0x18] sm:$0xff]  ;;  %v79_v19 = vunpack.c.0.s8 %v670_v15  ;;  %v80_v20 = vunpack.c.1.s8 %v670_v15  ;;  %v81_v47 = vunpack.c.2.s8 %v670_v15  ;;  %v82_v48 = vunpack.c.3.s8 %v670_v15 }
   0xd   :  { %v275_v21 = vld [vmem:[%s759_s2 + $0x40] sm:$0xff]  ;;  %v484_v22 = vld [vmem:[%s758_s1 + $0x8] sm:$0xff]  ;;  %v83_v23 = vunpack.c.0.s8 %v675_v16  ;;  %v84_v24 = vunpack.c.1.s8 %v675_v16  ;;  %v87_v26 = vunpack.c.0.s8 %v680_v17  ;;  %v88_v27 = vunpack.c.1.s8 %v680_v17  ;;  %v277_v32 = vld [vmem:[%s759_s2 + $0x50] sm:$0xff] }
   0xe   :  { %170 = vmatpush.bf16.msra.mxu0 %v487_v9  ;;  %310 = vperm.xlu2 %568, %v272_v10   ;;  %v276_v25 = vld [vmem:[%s759_s2 + $0x48] sm:$0xff]  ;;  %v91_v28 = vunpack.c.0.s8 %v685_v18  ;;  %v92_v29 = vunpack.c.1.s8 %v685_v18  ;;  %v95_v30 = vcvt.s32.f32 %v79_v19  ;;  %v96_v31 = vcvt.s32.f32 %v80_v20  ;;  %v483_v33 = vld [vmem:[%s758_s1] sm:$0xff]  ;;  %v278_v41 = vld [vmem:[%s759_s2 + $0x58] sm:$0xff] }
   0xf   :  { %547 = vmatpush.bf16.msra.mxu1 %v487_v9  ;;  %548 = vmatpush.bf16.msra.mxu2 %v487_v9  ;;  %v99_v34 = vcvt.s32.f32 %v83_v23  ;;  %v100_v35 = vcvt.s32.f32 %v84_v24  ;;  %v103_v36 = vcvt.s32.f32 %v87_v26  ;;  %v104_v37 = vcvt.s32.f32 %v88_v27  ;;  %v279_v43 = vld [vmem:[%s759_s2 + $0x60] sm:$0xff]  ;;  %v280_v46 = vld [vmem:[%s759_s2 + $0x68] sm:$0xff]  ;;  %v281_v49 = vld [vmem:[%s759_s2 + $0x70] sm:$0xff] }
  0x10   :  { %549 = vmatpush.bf16.msra.mxu3 %v487_v9  ;;  %v107_v38 = vcvt.s32.f32 %v91_v28  ;;  %v108_v39 = vcvt.s32.f32 %v92_v29  ;;  %v111_v40 = vpack.c.bf16 %v96_v31, %v95_v30  ;;  %v85_v50 = vunpack.c.2.s8 %v675_v16  ;;  %v282_v52 = vld [vmem:[%s759_s2 + $0x78] sm:$0xff] }
  0x11   :  { %v113_v42 = vpack.c.bf16 %v100_v35, %v99_v34  ;;  %v115_v44 = vpack.c.bf16 %v104_v37, %v103_v36  ;;  %v86_v51 = vunpack.c.3.s8 %v675_v16  ;;  %v89_v53 = vunpack.c.2.s8 %v680_v17 }
  0x12   :  { %315 = vperm.xlu0 %566, %v273_v12   ;;  %171 = vmatpush.bf16.msra.mxu0 %v486_v11  ;;  %v117_v45 = vpack.c.bf16 %v108_v39, %v107_v38  ;;  %v90_v54 = vunpack.c.3.s8 %v680_v17  ;;  %v93_v55 = vunpack.c.2.s8 %v685_v18  ;;  %v94_v56 = vunpack.c.3.s8 %v685_v18  ;;  %v736_v18 = vld [vmem:[%s760_s3] ss:$0 sm:$0xff]  ;;  %s597_s3 = smov [#allocation3]  }
  0x13   :  { %550 = vmatpush.bf16.msra.mxu1 %v486_v11  ;;  %551 = vmatpush.bf16.msra.mxu2 %v486_v11  ;;  %v97_v57 = vcvt.s32.f32 %v81_v47  ;;  %v98_v58 = vcvt.s32.f32 %v82_v48  ;;  %v101_v59 = vcvt.s32.f32 %v85_v50  ;;  %v102_v60 = vcvt.s32.f32 %v86_v51  ;;  %s435_s18 = sshll.u32 %s597_s3, 4  ;;  %s436_s18 = int_to_ptr.vmem [resolvable:$true] %s435_s18 }
  0x14   :  { %552 = vmatpush.bf16.msra.mxu3 %v486_v11  ;;  %320 = vperm.xlu1 %567, %v274_v13   ;;  %v105_v61 = vcvt.s32.f32 %v89_v53  ;;  %v106_v62 = vcvt.s32.f32 %v90_v54  ;;  %v109_v63 = vcvt.s32.f32 %v93_v55  ;;  %v110_v0 = vcvt.s32.f32 %v94_v56 }
  0x15   :  { %v112_v1 = vpack.c.bf16 %v98_v58, %v97_v57  ;;  %v114_v2 = vpack.c.bf16 %v102_v60, %v101_v59 }
  0x16   :  { %172 = vmatpush.bf16.msra.mxu0 %v485_v14  ;;  %325 = vperm.xlu2 %568, %v275_v21   ;;  %v116_v3 = vpack.c.bf16 %v106_v62, %v105_v61  ;;  %v118_v4 = vpack.c.bf16 %v110_v0, %v109_v63 }
  0x17   :  { %553 = vmatpush.bf16.msra.mxu1 %v485_v14  ;;  %554 = vmatpush.bf16.msra.mxu2 %v485_v14 }
  0x18   :  { %555 = vmatpush.bf16.msra.mxu3 %v485_v14 }
  0x1a   :  { %330 = vperm.xlu0 %566, %v276_v25   ;;  %173 = vmatpush.bf16.msra.mxu0 %v484_v22 }
  0x1b   :  { %556 = vmatpush.bf16.msra.mxu1 %v484_v22  ;;  %557 = vmatpush.bf16.msra.mxu2 %v484_v22 }
  0x1c   :  { %558 = vmatpush.bf16.msra.mxu3 %v484_v22  ;;  %335 = vperm.xlu1 %567, %v277_v32  }
  0x1e   :  { %174 = vmatpush.bf16.msra.mxu0 %v483_v33  ;;  %340 = vperm.xlu2 %568, %v278_v41  }
  0x1f   :  { %559 = vmatpush.bf16.msra.mxu1 %v483_v33  ;;  %560 = vmatpush.bf16.msra.mxu2 %v483_v33 }
  0x20   :  { %561 = vmatpush.bf16.msra.mxu3 %v483_v33 }
  0x21   :  { %175 = vmatmul.bf16.vlgmr.msra.gmra.mxu0 %v111_v40 }
  0x22   :  { %345 = vperm.xlu0 %566, %v279_v43   ;;  %185 = vmatmul.bf16.vlgmr.msra.gmra.mxu1 %v113_v42 }
  0x23   :  { %195 = vmatmul.bf16.vlgmr.msra.gmra.mxu2 %v115_v44  ;;  %205 = vmatmul.bf16.vlgmr.msra.gmra.mxu3 %v117_v45 }
  0x24   :  { %350 = vperm.xlu1 %567, %v280_v46  }
  0x26   :  { %355 = vperm.xlu2 %568, %v281_v49  }
  0x2a   :  { %360 = vperm.xlu0 %566, %v282_v52  }
  0x31   :  { %180 = vmatmul.bf16.gmra.mxu0 %v112_v1 }
  0x32   :  { %190 = vmatmul.bf16.gmra.mxu1 %v114_v2 }
  0x33   :  { %200 = vmatmul.bf16.gmra.mxu2 %v116_v3  ;;  %210 = vmatmul.bf16.gmra.mxu3 %v118_v4 }
  0x60   :  { %v306_v9 = vpop.permute.xlu2 %305 }
  0x68   :  { %v311_v12 = vpop.permute.xlu2 %310 }
  0x70   :  { %v326_v24 = vpop.permute.xlu2 %325 }
  0x74   :  { %v286_v5 = vpop.permute.xlu0 %285 }
  0x76   :  { %v296_v6 = vpop.permute.xlu1 %295 }
  0x78   :  { %v341_v47 = vpop.permute.xlu2 %340 }
  0x7c   :  { %v291_v7 = vpop.permute.xlu0 %290 }
  0x7e   :  { %v301_v8 = vpop.permute.xlu1 %300 }
  0x80   :  { %v356_v62 = vpop.permute.xlu2 %355 }
  0x84   :  { %v316_v10 = vpop.permute.xlu0 %315 }
  0x86   :  { %v321_v11 = vpop.permute.xlu1 %320 }
  0x8c   :  { %v331_v15 = vpop.permute.xlu0 %330 }
  0x8e   :  { %v336_v16 = vpop.permute.xlu1 %335 }
  0x94   :  { %v346_v31 = vpop.permute.xlu0 %345 }
  0x96   :  { %v351_v34 = vpop.permute.xlu1 %350 }
  0x9c   :  { %v361_v1 = vpop.permute.xlu0 %360 }
  0x9e   :  { %v176_v13 = vpop.f32.mrf.mxu0 }
  0x9f   :  { %v186_v14 = vpop.f32.mrf.mxu1  ;;  %v363_v17 = vmul.f32 %v286_v5, %v176_v13 }
  0xa0   :  { %v367_v19 = vmul.f32 %v306_v9, %v186_v14 }
  0xa1   :  { %v383_v27 = vadd.f32 %v736_v18, %v363_v17 }
  0xa2   :  { %v387_v28 = vadd.f32 %v736_v18, %v367_v19 }
  0xa6   :  { %v196_v20 = vpop.f32.mrf.mxu2  ;;  %v206_v21 = vpop.f32.mrf.mxu3 }
  0xa7   :  { %v178_v22 = vpop.f32.mrf.mxu0  ;;  %v188_v23 = vpop.f32.mrf.mxu1  ;;  %v371_v35 = vmul.f32 %v326_v24, %v196_v20  ;;  %v375_v36 = vmul.f32 %v346_v31, %v206_v21 }
  0xa8   :  { %v364_v25 = vmul.f32 %v291_v7, %v178_v22  ;;  %v368_v26 = vmul.f32 %v311_v12, %v188_v23 }
  0xa9   :  { %v391_v43 = vadd.f32 %v736_v18, %v371_v35  ;;  %v395_v44 = vadd.f32 %v736_v18, %v375_v36 }
  0xaa   :  { %v384_v29 = vadd.f32 %v736_v18, %v364_v25  ;;  %v388_v30 = vadd.f32 %v736_v18, %v368_v26 }
  0xac   :  { %v494_v32 = vpack.c.bf16 %v384_v29, %v383_v27  ;;  %v504_v33 = vpack.c.bf16 %v388_v30, %v387_v28 }
  0xae   :  { %495 = vst [vmem:[#allocation3] sm:$0xff] %v494_v32   ;;  %v198_v37 = vpop.f32.mrf.mxu2  ;;  %v208_v38 = vpop.f32.mrf.mxu3 }
  0xaf   :  { %532 = vst [vmem:[#allocation3 + $0x10] sm:$0xff] %v504_v33   ;;  %v372_v39 = vmul.f32 %v331_v15, %v198_v37  ;;  %v376_v40 = vmul.f32 %v351_v34, %v208_v38  ;;  %v181_v41 = vpop.f32.mrf.mxu0  ;;  %v191_v42 = vpop.f32.mrf.mxu1 }
  0xb0   :  { %v365_v50 = vmul.f32 %v296_v6, %v181_v41  ;;  %v369_v51 = vmul.f32 %v316_v10, %v191_v42 }
  0xb1   :  { %v392_v45 = vadd.f32 %v736_v18, %v372_v39  ;;  %v396_v46 = vadd.f32 %v736_v18, %v376_v40 }
  0xb2   :  { %v385_v58 = vadd.f32 %v736_v18, %v365_v50  ;;  %v389_v59 = vadd.f32 %v736_v18, %v369_v51 }
  0xb3   :  { %v514_v48 = vpack.c.bf16 %v392_v45, %v391_v43  ;;  %v524_v49 = vpack.c.bf16 %v396_v46, %v395_v44 }
  0xb5   :  { %534 = vst [vmem:[#allocation3 + $0x20] sm:$0xff] %v514_v48  }
  0xb6   :  { %536 = vst [vmem:[#allocation3 + $0x30] sm:$0xff] %v524_v49   ;;  %v201_v52 = vpop.f32.mrf.mxu2  ;;  %v211_v53 = vpop.f32.mrf.mxu3 }
  0xb7   :  { %v183_v54 = vpop.f32.mrf.mxu0  ;;  %v193_v55 = vpop.f32.mrf.mxu1  ;;  %v373_v2 = vmul.f32 %v336_v16, %v201_v52  ;;  %v377_v3 = vmul.f32 %v356_v62, %v211_v53 }
  0xb8   :  { %v366_v56 = vmul.f32 %v301_v8, %v183_v54  ;;  %v370_v57 = vmul.f32 %v321_v11, %v193_v55 }
  0xb9   :  { %v393_v8 = vadd.f32 %v736_v18, %v373_v2  ;;  %v397_v9 = vadd.f32 %v736_v18, %v377_v3 }
  0xba   :  { %v386_v60 = vadd.f32 %v736_v18, %v366_v56  ;;  %v390_v61 = vadd.f32 %v736_v18, %v370_v57 }
  0xbc   :  { %v499_v63 = vpack.c.bf16 %v386_v60, %v385_v58  ;;  %v509_v0 = vpack.c.bf16 %v390_v61, %v389_v59 }
  0xbe   :  { %531 = vst [vmem:[#allocation3 + $0x8] sm:$0xff] %v499_v63   ;;  %v203_v4 = vpop.f32.mrf.mxu2  ;;  %v213_v5 = vpop.f32.mrf.mxu3 }
  0xbf   :  { %533 = vst [vmem:[#allocation3 + $0x18] sm:$0xff] %v509_v0   ;;  %v374_v6 = vmul.f32 %v341_v47, %v203_v4  ;;  %v378_v7 = vmul.f32 %v361_v1, %v213_v5 }
  0xc1   :  { %v394_v10 = vadd.f32 %v736_v18, %v374_v6  ;;  %v398_v11 = vadd.f32 %v736_v18, %v378_v7 }
  0xc3   :  { %v519_v12 = vpack.c.bf16 %v394_v10, %v393_v8  ;;  %v529_v13 = vpack.c.bf16 %v398_v11, %v397_v9 }
  0xc5   :  { %535 = vst [vmem:[#allocation3 + $0x28] sm:$0xff] %v519_v12  }
  0xc6   :  { %537 = vst [vmem:[#allocation3 + $0x38] sm:$0xff] %v529_v13  }
  0xc7   :  { %443 = dma.vmem_to_hbm [thread:$0]  %s436_s18, 1024, %s438_s21, [#allocation4], %s598_s22, %s598_s22, %s599_s23  }
  0xc8   :  { %594 = dma.done.wait [#allocation4], 1024  }
  0xc9   :  { %595 = vsyncadd [#allocation4], 4294966272 }
  0xca   :  { %448 = vsyncpa [#allocation4], 1 }

</bundles_post_ra>
